<compile_context>
chip_gen: v5e
topology: v5e:2x2
jax: 0.10.0
libtpu: 0.0.40
codegen_flags: <defaults>
</compile_context>

<pallas_src>
import jax
import jax.numpy as jnp
from jax.experimental import pallas as pl
from jax.experimental.pallas import tpu as pltpu


def _round_up(v, m):
    return (v + m - 1) // m * m


def _device_kind():
    try:
        return jax.devices()[0].device_kind.lower()
    except Exception:
        return ""


def _default_compute_dtype():
    """bf16 MXU operands on v5e/v6e/v7x (all natively bf16 MXUs, f32 accum);
    fall back to f32 only on very old generations."""
    kind = _device_kind()
    for old in ("v2", "v3", "v4"):
        if old in kind:
            return jnp.float32
    return jnp.bfloat16


def _num_tensorcores():
    # v7x has 2 TensorCores per chip; the "parallel" grid axis shards across them.
    kind = _device_kind()
    return 2 if ("v7" in kind or "7x" in kind) else 1


# ----------------------------------------------------------------------------
# Pallas kernel: fused Linear -> ReLU -> Linear (the forward_training hot path)
# ----------------------------------------------------------------------------
def _mlp_kernel(x_ref, w1_ref, b1_ref, w2_ref, b2_ref, o_ref):
    # x arrives f32 at its true feature width; cast to the MXU operand dtype
    # in-register (no wrapper-side pad/convert, no padded HBM stream).
    x = x_ref[...].astype(w1_ref.dtype)                               # [TN, F]
    h = jnp.dot(x, w1_ref[...], preferred_element_type=jnp.float32)  # MXU, f32 acc
    h = h + b1_ref[...]                                               # f32 bias (VPU)
    h = jnp.maximum(h, 0.0)                                           # ReLU (VPU)
    h = h.astype(w2_ref.dtype)                                        # bf16 operand (no-op if f32)
    y = jnp.dot(h, w2_ref[...], preferred_element_type=jnp.float32)  # MXU, f32 acc
    y = y + b2_ref[...]
    o_ref[...] = y.astype(o_ref.dtype)                                # narrow f32 store


_TILE_MAX = 2048   # rows per grid step; double-buffered tiles stay well under VMEM limits
_SUB = 8           # f32 sublane granularity


def mlp_forward(x, w1p, b1p, w2p, b2p, *, out_features):
    """Fused MLP forward as one Pallas TPU kernel.

    x: (n, f) f32, streamed per batch tile at its true feature width.
    w1p: (f, h_pad) compute-dtype, b1p: (1, h_pad) f32,
    w2p: (h_pad, out_features) compute-dtype, b2p: (1, out_features) f32,
    all VMEM-resident constant-index blocks.
    """
    n, f = x.shape
    h_pad = w1p.shape[1]

    # Pad batch only to the sublane multiple; the last grid block may be partial
    # (out-of-bounds rows are discarded on store).
    n_pad = _round_up(n, _SUB)
    xp = x if n_pad == n else jnp.zeros((n_pad, f), x.dtype).at[:n, :].set(x)

    tile_n = min(_TILE_MAX, n_pad)
    ncores = _num_tensorcores()
    if ncores > 1 and n_pad >= 2 * _SUB:
        # ensure >= 1 tile per TensorCore so the parallel axis actually shards
        tile_n = min(tile_n, _round_up(pl.cdiv(n_pad, ncores), _SUB))
    num_tiles = pl.cdiv(n_pad, tile_n)

    w_bytes = jnp.dtype(w1p.dtype).itemsize
    cost = pl.CostEstimate(
        flops=2 * n_pad * (f * h_pad + h_pad * out_features),
        transcendentals=0,
        bytes_accessed=(xp.size * 4
                        + (w1p.size + w2p.size) * w_bytes
                        + (b1p.size + b2p.size) * 4
                        + n_pad * out_features * 4),
    )

    out = pl.pallas_call(
        _mlp_kernel,
        out_shape=jax.ShapeDtypeStruct((n_pad, out_features), jnp.float32),
        grid=(num_tiles,),
        in_specs=[
            pl.BlockSpec((tile_n, f), lambda i: (i, 0)),             # x: streamed per tile
            pl.BlockSpec((f, h_pad), lambda i: (0, 0)),              # w1: VMEM-resident
            pl.BlockSpec((1, h_pad), lambda i: (0, 0)),              # b1: VMEM-resident
            pl.BlockSpec((h_pad, out_features), lambda i: (0, 0)),   # w2: VMEM-resident
            pl.BlockSpec((1, out_features), lambda i: (0, 0)),       # b2: VMEM-resident
        ],
        out_specs=pl.BlockSpec((tile_n, out_features), lambda i: (i, 0)),
        compiler_params=pltpu.CompilerParams(
            dimension_semantics=("parallel",),                       # megacore on v7x
            vmem_limit_bytes=32 * 1024 * 1024,                       # safe on 64 MiB v7x
        ),
        cost_estimate=cost,
    )(xp, w1p, b1p, w2p, b2p)

    return out if n_pad == n else out[:n]


# ----------------------------------------------------------------------------
# PytorchNN dispatch semantics (plain-Python glue, matching the torch module)
# ----------------------------------------------------------------------------
class PallasNN:
    """Mirror of PytorchNN.forward() dispatch with a concrete forward_training."""

    # stand-ins for AutoEncoderModel.ENCODE / DECODE
    ENCODE = "encode"
    DECODE = "decode"

    def __init__(self, in_features=16, hidden=32, out_features=8, seed=0,
                 compute_dtype=None):
        if compute_dtype is None:
            compute_dtype = _default_compute_dtype()
        self.compute_dtype = compute_dtype
        self.in_features = in_features
        self.hidden = hidden
        self.out_features = out_features

        # Deterministic f32 master parameters (synthetic init, no checkpoint).
        key = jax.random.PRNGKey(seed)
        k1, k2 = jax.random.split(key)
        self.w1 = (jax.random.normal(k1, (in_features, hidden), jnp.float32)
                   * (1.0 / jnp.sqrt(in_features)))
        self.b1 = jnp.zeros((1, hidden), jnp.float32)
        self.w2 = (jax.random.normal(k2, (hidden, out_features), jnp.float32)
                   * (1.0 / jnp.sqrt(hidden)))
        self.b2 = jnp.zeros((1, out_features), jnp.float32)

        # Kernel-ready copies built once at init:
        #   hidden (the only internal lane dim) padded to 128 for lane-dense
        #   intermediates; input/output feature widths kept at true size.
        h_pad = _round_up(hidden, 128)
        self._w1p = jnp.zeros((in_features, h_pad), compute_dtype).at[
            :, :hidden].set(self.w1.astype(compute_dtype))
        self._w2p = jnp.zeros((h_pad, out_features), compute_dtype).at[
            :hidden, :].set(self.w2.astype(compute_dtype))
        # Biases stay f32 (added after f32 accumulation), (1, lanes) blocks.
        self._b1p = jnp.zeros((1, h_pad), jnp.float32).at[:, :hidden].set(self.b1)
        self._b2p = self.b2

        self.training = False

    # --- forward dispatch, identical control flow to PytorchNN.forward -------
    def __call__(self, *inputs, state=None, **kwargs):
        if self.training:
            return self.forward_training(*inputs)
        elif state == PallasNN.ENCODE:
            return self.encode(*inputs)
        elif state == PallasNN.DECODE:
            return self.decode(*inputs)
        else:
            return self.forward_predict(*inputs)

    # --- abstract in the torch base class; concretized here as a Pallas MLP --
    def forward_training(self, x):
        return mlp_forward(x, self._w1p, self._b1p, self._w2p, self._b2p,
                           out_features=self.out_features)

    def forward_predict(self, x):
        # base class: forward_predict delegates to forward_training
        return self.forward_training(x)

    def encode(self, *inputs):
        # base class raises: only autoencoder subclasses implement these
        raise NotImplementedError(
            'For autoencoders the methods `encode` and `decode` need to be implemented!')

    def decode(self, *inputs):
        raise NotImplementedError(
            'For autoencoders the methods `encode` and `decode` need to be implemented!')

    # --- L1/L2 regularization hooks: pure metadata, no compute ---------------
    def L1(self):
        return {}

    def L2(self):
        return {}


if __name__ == "__main__":
    batch, in_features, hidden, out_features = 8, 16, 32, 8

    key = jax.random.PRNGKey(0)
    x = jax.random.normal(key, (batch, in_features), jnp.float32)

    model = PallasNN(in_features, hidden, out_features, seed=0)

    # eval-mode predict path (training=False, state=None -> forward_predict)
    y_pred = jax.block_until_ready(model(x))

    # training path (same compute by construction of the base class)
    model.training = True
    y_train = jax.block_until_ready(model(x))

    # sanity: reference in plain JAX (f32 master weights)
    h_ref = jnp.maximum(x @ model.w1 + model.b1, 0.0)
    y_ref = h_ref @ model.w2 + model.b2
    if jnp.dtype(model.compute_dtype) == jnp.dtype(jnp.bfloat16):
        atol, rtol = 3e-2, 3e-2     # bf16 MXU operands, f32 accumulation
    else:
        atol, rtol = 1e-5, 1e-5
    assert y_pred.shape == (batch, out_features)
    assert jnp.allclose(y_pred, y_ref, atol=atol, rtol=rtol)
    assert jnp.allclose(y_train, y_pred)

    # non-multiple-of-8 batch exercises the sublane padding + row slice path
    x_odd = jax.random.normal(jax.random.PRNGKey(1), (13, in_features), jnp.float32)
    y_odd = jax.block_until_ready(model(x_odd))
    h_odd = jnp.maximum(x_odd @ model.w1 + model.b1, 0.0)
    assert y_odd.shape == (13, out_features)
    assert jnp.allclose(y_odd, h_odd @ model.w2 + model.b2, atol=atol, rtol=rtol)

    # encode/decode must raise exactly like the torch base class
    try:
        model.training = False
        model(x, state=PallasNN.ENCODE)
        raise AssertionError("encode should have raised NotImplementedError")
    except NotImplementedError:
        pass

    print("KERNEL_OK")
</pallas_src>

<mosaic_0001>
module attributes {stable_mosaic.version = 11 : i64} {
  func.func @_mlp_kernel(%arg0: i32, %arg1: memref<8x16xf32, #tpu.memory_space<vmem>>, %arg2: memref<16x128xbf16, #tpu.memory_space<vmem>>, %arg3: memref<1x128xf32, #tpu.memory_space<vmem>>, %arg4: memref<128x8xbf16, #tpu.memory_space<vmem>>, %arg5: memref<1x8xf32, #tpu.memory_space<vmem>>, %arg6: memref<8x8xf32, #tpu.memory_space<vmem>>) attributes {dimension_semantics = [#tpu.dimension_semantics<parallel>], iteration_bounds = array<i64: 1>, scalar_prefetch = 0 : i64, scratch_operands = 0 : i64, tpu.core_type = #tpu.core_type<tc>, window_params = [{transform_indices = @transform_0, window_bounds = array<i64: 8, 16>}, {pipeline_mode = #tpu.pipeline_mode<synchronous>, transform_indices = @transform_1, window_bounds = array<i64: 16, 128>}, {pipeline_mode = #tpu.pipeline_mode<synchronous>, transform_indices = @transform_2, window_bounds = array<i64: 1, 128>}, {pipeline_mode = #tpu.pipeline_mode<synchronous>, transform_indices = @transform_3, window_bounds = array<i64: 128, 8>}, {pipeline_mode = #tpu.pipeline_mode<synchronous>, transform_indices = @transform_4, window_bounds = array<i64: 1, 8>}, {transform_indices = @transform_5, window_bounds = array<i64: 8, 8>}]} {
    %c0 = arith.constant 0 : index
    %c0_0 = arith.constant 0 : index
    %0 = vector.load %arg1[%c0, %c0_0] : memref<8x16xf32, #tpu.memory_space<vmem>>, vector<8x16xf32>
    %1 = arith.truncf %0 : vector<8x16xf32> to vector<8x16xbf16>
    %c0_1 = arith.constant 0 : index
    %c0_2 = arith.constant 0 : index
    %2 = vector.load %arg2[%c0_1, %c0_2] : memref<16x128xbf16, #tpu.memory_space<vmem>>, vector<16x128xbf16>
    %cst = arith.constant dense<0.000000e+00> : vector<8x128xf32>
    %3 = tpu.matmul %1, %2, %cst {dimension_numbers = #tpu.dot_dimension_numbers<[1], [0], [0], [1], [0, 0, 1, 1], [], []>} : vector<8x16xbf16>, vector<16x128xbf16>, vector<8x128xf32> -> vector<8x128xf32>
    %c0_3 = arith.constant 0 : index
    %c0_4 = arith.constant 0 : index
    %4 = vector.load %arg3[%c0_3, %c0_4] : memref<1x128xf32, #tpu.memory_space<vmem>>, vector<1x128xf32>
    %5 = vector.broadcast %4 : vector<1x128xf32> to vector<8x128xf32>
    %6 = arith.addf %3, %5 : vector<8x128xf32>
    %cst_5 = arith.constant 0.000000e+00 : f32
    %7 = vector.broadcast %cst_5 : f32 to vector<8x128xf32>
    %8 = arith.maximumf %6, %7 : vector<8x128xf32>
    %9 = arith.truncf %8 : vector<8x128xf32> to vector<8x128xbf16>
    %c0_6 = arith.constant 0 : index
    %c0_7 = arith.constant 0 : index
    %10 = vector.load %arg4[%c0_6, %c0_7] : memref<128x8xbf16, #tpu.memory_space<vmem>>, vector<128x8xbf16>
    %cst_8 = arith.constant dense<0.000000e+00> : vector<8x8xf32>
    %11 = tpu.matmul %9, %10, %cst_8 {dimension_numbers = #tpu.dot_dimension_numbers<[1], [0], [0], [1], [0, 0, 1, 1], [], []>} : vector<8x128xbf16>, vector<128x8xbf16>, vector<8x8xf32> -> vector<8x8xf32>
    %c0_9 = arith.constant 0 : index
    %c0_10 = arith.constant 0 : index
    %12 = vector.load %arg5[%c0_9, %c0_10] : memref<1x8xf32, #tpu.memory_space<vmem>>, vector<1x8xf32>
    %13 = vector.broadcast %12 : vector<1x8xf32> to vector<8x8xf32>
    %14 = arith.addf %11, %13 : vector<8x8xf32>
    %c0_11 = arith.constant 0 : index
    %c0_12 = arith.constant 0 : index
    %15 = vector.load %arg6[%c0_11, %c0_12] : memref<8x8xf32, #tpu.memory_space<vmem>>, vector<8x8xf32>
    tpu.vector_store %arg6[%c0_11, %c0_12], %14 {strides = array<i32>} : memref<8x8xf32, #tpu.memory_space<vmem>>, vector<8x8xf32>,
    return
  }
  func.func @transform_0(%arg0: i32) -> (i32, i32) {
    %c0_i32 = arith.constant 0 : i32
    %c0_i32_0 = arith.constant 0 : i32
    return %arg0, %c0_i32 : i32, i32
  }
  func.func @transform_1(%arg0: i32) -> (i32, i32) {
    %c0_i32 = arith.constant 0 : i32
    %c0_i32_0 = arith.constant 0 : i32
    %c0_i32_1 = arith.constant 0 : i32
    return %c0_i32, %c0_i32_0 : i32, i32
  }
  func.func @transform_2(%arg0: i32) -> (i32, i32) {
    %c0_i32 = arith.constant 0 : i32
    %c0_i32_0 = arith.constant 0 : i32
    %c0_i32_1 = arith.constant 0 : i32
    return %c0_i32, %c0_i32_0 : i32, i32
  }
  func.func @transform_3(%arg0: i32) -> (i32, i32) {
    %c0_i32 = arith.constant 0 : i32
    %c0_i32_0 = arith.constant 0 : i32
    %c0_i32_1 = arith.constant 0 : i32
    return %c0_i32, %c0_i32_0 : i32, i32
  }
  func.func @transform_4(%arg0: i32) -> (i32, i32) {
    %c0_i32 = arith.constant 0 : i32
    %c0_i32_0 = arith.constant 0 : i32
    %c0_i32_1 = arith.constant 0 : i32
    return %c0_i32, %c0_i32_0 : i32, i32
  }
  func.func @transform_5(%arg0: i32) -> (i32, i32) {
    %c0_i32 = arith.constant 0 : i32
    %c0_i32_0 = arith.constant 0 : i32
    return %arg0, %c0_i32 : i32, i32
  }
}

</mosaic_0001>

<bundles_post_ra>
// kernel: tpu_custom_call.1
= control target key start
LH: loop header
LB: loop body
LE: loop exit
PB: predicated region body
PF: predicated region fallthrough
CT: control target
= control target key end

     0   :  { %vm36_vm0 = vcmask 130048   ;;  %s299_s0 = inlined_call_operand.vmem [shape: f32[8,16], index: 0, kind: input, shape index: {}]   ;;  %s300_s1 = inlined_call_operand.vmem [shape: bf16[16,128], index: 1, kind: input, shape index: {}]   ;;  %s301_s2 = inlined_call_operand.vmem [shape: f32[1,128], index: 2, kind: input, shape index: {}]   ;;  %s302_s3 = inlined_call_operand.vmem [shape: bf16[128,8], index: 3, kind: input, shape index: {}]   ;;  %s303_s4 = inlined_call_operand.vmem [shape: f32[1,8], index: 4, kind: input, shape index: {}]   ;;  %s304_s5 = inlined_call_operand.hbm [shape: f32[8,8], index: 5, kind: output, shape index: {}]  }
   0x1   :  { %v191_v0 = vld [vmem:[%s300_s1] sm:$0xff]  ;;  %v199_v2 = vld [vmem:[%s302_s3 + $0x38] sm:$0xff]  ;;  %v198_v4 = vld [vmem:[%s302_s3 + $0x30] sm:$0xff] }
   0x2   :  { %v22_v1 = vld [vmem:[%s299_s0] sm:$0xff]  ;;  %47 = vmatpush.bf16.msra.mxu0 %v191_v0  ;;  %123 = vmatpush.bf16.msra.mxu1 %v199_v2 }
   0x3   :  { %v23_v3 = vpack.c.bf16 %v22_v1, %v22_v1 }
   0x4   :  { %10 = vsyncpa [#allocation3], 0  ;;  %v197_v5 = vld [vmem:[%s302_s3 + $0x28] sm:$0xff]  ;;  %v196_v6 = vld [vmem:[%s302_s3 + $0x20] sm:$0xff]  ;;  %s229_s15 = smov [#allocation2]   ;;  %vm136_vm1 = vcmask 64512  }
   0x5   :  { %158 = vmatmul.msk.bf16.vlgmr.msra.gmra.mxu0 %vm36_vm0, %v23_v3  ;;  %v195_v7 = vld [vmem:[%s302_s3 + $0x18] sm:$0xff]  ;;  %v194_v8 = vld [vmem:[%s302_s3 + $0x10] sm:$0xff]  ;;  %v193_v9 = vld [vmem:[%s302_s3 + $0x8] sm:$0xff]  ;;  %s143_s16 = sshll.u32 %s229_s15, 4  ;;  %s144_s16 = int_to_ptr.vmem [resolvable:$true] %s143_s16 }
   0x6   :  { %124 = vmatpush.bf16.msra.mxu1 %v198_v4  ;;  %v192_v10 = vld [vmem:[%s302_s3] sm:$0xff]  ;;  %s145_s3 = sshll.u32 %s304_s5, 4  ;;  %s146_s3 = int_to_ptr.hbm [resolvable:$true] %s145_s3 }
   0x7   :  { %v201_v11 = vld [vmem:[%s301_s2] ss:$0 sm:$0xff] }
   0x8   :  { %v202_v17 = vld [vmem:[%s303_s4] ss:$0 sm:$0xff] }
   0xa   :  { %125 = vmatpush.bf16.msra.mxu1 %v197_v5 }
   0xe   :  { %126 = vmatpush.bf16.msra.mxu1 %v196_v6 }
  0x12   :  { %127 = vmatpush.bf16.msra.mxu1 %v195_v7 }
  0x16   :  { %128 = vmatpush.bf16.msra.mxu1 %v194_v8 }
  0x1a   :  { %129 = vmatpush.bf16.msra.mxu1 %v193_v9 }
  0x1e   :  { %130 = vmatpush.bf16.msra.mxu1 %v192_v10 }
  0x82   :  { %v49_v12 = vpop.f32.mrf.mxu0 }
  0x83   :  { %v50_v13 = vadd.f32 %v201_v11, %v49_v12 }
  0x85   :  { %v53_v14 = vmax.f32 %v50_v13, 0.0 }
  0x87   :  { %v54_v15 = vpack.c.bf16 %v53_v14, %v53_v14 }
  0x89   :  { %131 = vmatmul.bf16.vlgmr.msra.gmra.mxu1 %v54_v15 }
  0x8a   :  { %v51_v16 = vpop.f32.mrf.mxu0 }
 0x106   :  { %v132_v18 = vpop.f32.mrf.mxu1 }
 0x107   :  { %v133_v19 = vadd.f32 %v202_v17, %v132_v18 }
 0x109   :  { %137 = vst.msk [vmem:[#allocation2] sm:$0xff] %vm136_vm1, %v133_v19 }
 0x10a   :  { %148 = dma.vmem_to_hbm [thread:$0]  %s144_s16, 128, %s146_s3, [#allocation3]  }
 0x10e   :  { %v134_v20 = vpop.f32.mrf.mxu1 }
 0x10f   :  { %227 = dma.done.wait [#allocation3], 128  }
 0x110   :  { %228 = vsyncadd [#allocation3], 4294967168 }
 0x111   :  { %153 = vsyncpa [#allocation3], 1 }

</bundles_post_ra>
